<compile_context>
chip_gen: v7x
topology: tpu7x:2x2x1
jax: 0.10.0
libtpu: 0.0.40
codegen_flags: <defaults>
</compile_context>

<pallas_src>
import functools

import jax
import jax.numpy as jnp
from jax.experimental import pallas as pl
from jax.experimental.pallas import tpu as pltpu


# ----------------------------- helpers ------------------------------------ #

def _round_up(x: int, m: int) -> int:
    return ((x + m - 1) // m) * m


def _vmem_budget_bytes() -> int:
    """~80% of physical VMEM (128 MiB on v5e/v6e, 64 MiB on v7x); safe fallback."""
    try:
        phys = int(pltpu.get_tpu_info().vmem_capacity_bytes)
    except Exception:
        phys = 128 * 1024 * 1024
    return int(phys * 0.8)


def _keep_mask(shape, row0, col0, n_cols, seed, drop_threshold):
    """Counter-based dropout keep-mask from a hash of the global element index.

    Uses only plain integer VPU ops (no stateful hardware PRNG), so it works on TPU and
    in interpret mode, and the mask does not depend on tile sizes or grid shape.
    P(keep) == 1 - dropout_p via an integer-space threshold compare.
    """
    rows = jax.lax.broadcasted_iota(jnp.int32, shape, 0) + row0
    cols = jax.lax.broadcasted_iota(jnp.int32, shape, 1) + col0
    idx = (rows * n_cols + cols).astype(jnp.uint32)
    x = idx + seed.astype(jnp.uint32) * jnp.uint32(0x9E3779B9)
    x = (x ^ (x >> 16)) * jnp.uint32(0x7FEB352D)   # lowbias32-style avalanche
    x = (x ^ (x >> 15)) * jnp.uint32(0x846CA68B)
    x = x ^ (x >> 16)
    return x >= jnp.uint32(drop_threshold)


# ----------------------------- kernels ------------------------------------ #
# Resident-weights fast path: grid = (M tiles,), full w1/w2/b1/b2 blocks (constant
# index_map), single dot -> bias -> ReLU -> dropout -> dot chain per M tile.

def _resident_eval_kernel(x_ref, w1_ref, b1_ref, w2_ref, b2_ref, o_ref):
    mm = w1_ref.dtype
    h = jnp.dot(x_ref[...], w1_ref[...], preferred_element_type=jnp.float32)
    h = jnp.maximum(h + b1_ref[...], 0.0)
    y = jnp.dot(h.astype(mm), w2_ref[...], preferred_element_type=jnp.float32)
    o_ref[...] = (y + b2_ref[...]).astype(o_ref.dtype)


def _resident_train_kernel(seed_ref, x_ref, w1_ref, b1_ref, w2_ref, b2_ref, o_ref,
                           *, drop_threshold, keep_scale, n_cols):
    mm = w1_ref.dtype
    h = jnp.dot(x_ref[...], w1_ref[...], preferred_element_type=jnp.float32)
    h = jnp.maximum(h + b1_ref[...], 0.0)
    row0 = pl.program_id(0) * x_ref.shape[0]
    keep = _keep_mask(h.shape, row0, 0, n_cols, seed_ref[0], drop_threshold)
    h = jnp.where(keep, h, 0.0)
    y = jnp.dot(h.astype(mm), w2_ref[...], preferred_element_type=jnp.float32)
    # 1/(1-p) folded in once here (a scalar factors through the linear map); b2 unscaled.
    o_ref[...] = (y * jnp.float32(keep_scale) + b2_ref[...]).astype(o_ref.dtype)


# Streamed path: grid = (M tiles, H tiles), H is the reduction axis (last, "arbitrary"),
# f32 accumulator in VMEM scratch, init/finalize via pl.when.

def _streamed_tile(x_ref, w1_ref, b1_ref, w2_ref, b2_ref, o_ref, acc_ref,
                   dropout_fn, out_scale):
    j = pl.program_id(1)

    @pl.when(j == 0)
    def _init():
        acc_ref[...] = jnp.zeros_like(acc_ref)

    mm = w1_ref.dtype
    h = jnp.dot(x_ref[...], w1_ref[...], preferred_element_type=jnp.float32)
    h = jnp.maximum(h + b1_ref[...], 0.0)
    if dropout_fn is not None:
        h = dropout_fn(h)
    acc_ref[...] += jnp.dot(h.astype(mm), w2_ref[...], preferred_element_type=jnp.float32)

    @pl.when(j == pl.num_programs(1) - 1)
    def _finalize():
        y = acc_ref[...]
        if out_scale is not None:
            y = y * jnp.float32(out_scale)        # dropout scale, applied once
        o_ref[...] = (y + b2_ref[...]).astype(o_ref.dtype)   # b2 added exactly once


def _streamed_eval_kernel(x_ref, w1_ref, b1_ref, w2_ref, b2_ref, o_ref, acc_ref):
    _streamed_tile(x_ref, w1_ref, b1_ref, w2_ref, b2_ref, o_ref, acc_ref, None, None)


def _streamed_train_kernel(seed_ref, x_ref, w1_ref, b1_ref, w2_ref, b2_ref, o_ref, acc_ref,
                           *, drop_threshold, keep_scale, n_cols):
    def dropout_fn(h):
        row0 = pl.program_id(0) * x_ref.shape[0]
        col0 = pl.program_id(1) * w1_ref.shape[1]
        keep = _keep_mask(h.shape, row0, col0, n_cols, seed_ref[0], drop_threshold)
        return jnp.where(keep, h, 0.0)            # scale folded into finalize

    _streamed_tile(x_ref, w1_ref, b1_ref, w2_ref, b2_ref, o_ref, acc_ref,
                   dropout_fn, keep_scale)


# ----------------------------- wrapper ------------------------------------ #

def feed_forward(x, params, *, dropout_p=0.1, training=False, seed=0,
                 matmul_dtype=jnp.bfloat16, out_dtype=None,
                 tm_target=512, th_target=1024,
                 vmem_budget_bytes=None, weights_resident=None):
    """x: [batch, seq, dim] -> [batch, seq, dim].

    Weights are stored transposed vs nn.Linear: w1 [D, H], w2 [H, D]; biases [1,H]/[1,D].
    Pass params already in `matmul_dtype` (bf16) to avoid per-call cast traffic.
    """
    w1, b1, w2, b2 = params["w1"], params["b1"], params["w2"], params["b2"]
    B, S, D = x.shape
    H = w1.shape[1]
    M = B * S

    out_dt = x.dtype if out_dtype is None else out_dtype
    mm_bytes = jnp.dtype(matmul_dtype).itemsize
    out_bytes = jnp.dtype(out_dt).itemsize
    budget = _vmem_budget_bytes() if vmem_budget_bytes is None else int(vmem_budget_bytes)

    # Operands (casts are no-ops if caller already stores bf16 params / activations).
    x_mm = x.reshape(M, D).astype(matmul_dtype)
    w1_mm = w1.astype(matmul_dtype)
    w2_mm = w2.astype(matmul_dtype)
    b1_f32 = b1.reshape(1, -1).astype(jnp.float32)
    b2_f32 = b2.reshape(1, -1).astype(jnp.float32)

    # ----- tile planning (fit to the VMEM budget) -----
    tm_target = max(8, (tm_target // 8) * 8)
    th_target = max(128, (th_target // 128) * 128)
    TM = tm_target if M >= tm_target else _round_up(M, 8)

    def resident_fp(tm):
        return (2 * 2 * D * H * mm_bytes            # w1 + w2 (count 2 buffers each)
                + 2 * (H + D) * 4                    # biases (f32)
                + 2 * tm * D * (mm_bytes + out_bytes)  # double-buffered x + out
                + tm * H * (4 + mm_bytes))           # h temporary (f32 + bf16 cast)

    def streamed_fp(tm, th):
        return (2 * tm * D * mm_bytes                # x
                + 2 * 2 * D * th * mm_bytes          # w1 + w2 tiles
                + 2 * (th + D) * 4                   # bias tiles
                + 2 * tm * D * out_bytes             # out
                + tm * D * 4                         # f32 accumulator
                + tm * th * (4 + mm_bytes))          # h temporary

    if weights_resident is None:
        use_resident = resident_fp(TM) <= budget
    else:
        use_resident = bool(weights_resident)

    if use_resident:
        while resident_fp(TM) > budget and TM > 128:
            TM = max(128, (TM // 2 // 8) * 8)
        TH, Hp = H, H
    else:
        if H <= 128:
            TH = H
        elif H <= th_target:
            TH = _round_up(H, 128)
        else:
            TH = th_target
        while streamed_fp(TM, TH) > budget and (TM > 128 or TH > 128):
            if TM >= TH and TM > 128:
                TM = max(128, (TM // 2 // 8) * 8)
            elif TH > 128:
                TH = max(128, (TH // 2 // 128) * 128)
            else:
                break
        Hp = _round_up(H, TH)

    Mp = _round_up(M, TM)
    n_m, n_h = Mp // TM, Hp // TH

    # Zero-padding: padded rows are sliced off; padded hidden columns contribute
    # relu(0 + 0) @ 0 == 0 to the output.
    if Mp != M:
        x_mm = jnp.pad(x_mm, ((0, Mp - M), (0, 0)))
    if Hp != H:
        w1_mm = jnp.pad(w1_mm, ((0, 0), (0, Hp - H)))
        b1_f32 = jnp.pad(b1_f32, ((0, 0), (0, Hp - H)))
        w2_mm = jnp.pad(w2_mm, ((0, Hp - H), (0, 0)))

    out_shape = jax.ShapeDtypeStruct((Mp, D), out_dt)
    compiler_params = pltpu.CompilerParams(
        dimension_semantics=("parallel",) if use_resident else ("parallel", "arbitrary"),
        vmem_limit_bytes=int(budget),
    )
    cost = pl.CostEstimate(
        flops=4 * M * D * H, transcendentals=0,
        bytes_accessed=int(Mp * D * (mm_bytes + out_bytes)
                           + (1 if use_resident else n_m) * 2 * D * Hp * mm_bytes),
    )

    is_train = bool(training) and float(dropout_p) > 0.0
    if is_train:
        drop_threshold = min(int(round(float(dropout_p) * (2 ** 32))), 2 ** 32 - 1)
        keep_scale = 1.0 / (1.0 - float(dropout_p))
        seed_arr = jnp.asarray([seed], dtype=jnp.int32)

    if use_resident:
        in_specs = [
            pl.BlockSpec((TM, D), lambda i, *_: (i, 0)),   # x tile (streamed over M)
            pl.BlockSpec((D, Hp), lambda i, *_: (0, 0)),   # w1 (resident, DMAed once)
            pl.BlockSpec((1, Hp), lambda i, *_: (0, 0)),   # b1 (resident)
            pl.BlockSpec((Hp, D), lambda i, *_: (0, 0)),   # w2 (resident)
            pl.BlockSpec((1, D),  lambda i, *_: (0, 0)),   # b2 (resident)
        ]
        out_spec = pl.BlockSpec((TM, D), lambda i, *_: (i, 0))
        grid = (n_m,)
        scratch = []
        if is_train:
            kernel = functools.partial(_resident_train_kernel,
                                       drop_threshold=drop_threshold,
                                       keep_scale=keep_scale, n_cols=Hp)
        else:
            kernel = _resident_eval_kernel
    else:
        in_specs = [
            pl.BlockSpec((TM, D), lambda i, j, *_: (i, 0)),   # x tile (resident across j)
            pl.BlockSpec((D, TH), lambda i, j, *_: (0, j)),   # w1 column block
            pl.BlockSpec((1, TH), lambda i, j, *_: (0, j)),   # b1 slice
            pl.BlockSpec((TH, D), lambda i, j, *_: (j, 0)),   # w2 row block
            pl.BlockSpec((1, D),  lambda i, j, *_: (0, 0)),   # b2 (resident)
        ]
        out_spec = pl.BlockSpec((TM, D), lambda i, j, *_: (i, 0))  # resident across j
        grid = (n_m, n_h)
        scratch = [pltpu.VMEM((TM, D), jnp.float32)]
        if is_train:
            kernel = functools.partial(_streamed_train_kernel,
                                       drop_threshold=drop_threshold,
                                       keep_scale=keep_scale, n_cols=Hp)
        else:
            kernel = _streamed_eval_kernel

    if is_train:
        grid_spec = pltpu.PrefetchScalarGridSpec(
            num_scalar_prefetch=1, grid=grid,
            in_specs=in_specs, out_specs=out_spec, scratch_shapes=scratch)
        out2d = pl.pallas_call(
            kernel, out_shape=out_shape, grid_spec=grid_spec,
            compiler_params=compiler_params, cost_estimate=cost,
        )(seed_arr, x_mm, w1_mm, b1_f32, w2_mm, b2_f32)
    else:
        grid_spec = pltpu.PrefetchScalarGridSpec(
            num_scalar_prefetch=0, grid=grid,
            in_specs=in_specs, out_specs=out_spec, scratch_shapes=scratch)
        out2d = pl.pallas_call(
            kernel, out_shape=out_shape, grid_spec=grid_spec,
            compiler_params=compiler_params, cost_estimate=cost,
        )(x_mm, w1_mm, b1_f32, w2_mm, b2_f32)

    if Mp != M:
        out2d = out2d[:M]
    return out2d.reshape(B, S, D)


# ----------------------------- reference / init ---------------------------- #

def _reference(x, params, matmul_dtype=jnp.bfloat16):
    """Pure-JAX reference mirroring the kernel's bf16-operand / f32-accumulate math."""
    B, S, D = x.shape
    xb = x.reshape(-1, D).astype(matmul_dtype)
    h = jnp.dot(xb, params["w1"].astype(matmul_dtype), preferred_element_type=jnp.float32)
    h = jnp.maximum(h + params["b1"].reshape(1, -1).astype(jnp.float32), 0.0)
    y = jnp.dot(h.astype(matmul_dtype), params["w2"].astype(matmul_dtype),
                preferred_element_type=jnp.float32)
    y = y + params["b2"].reshape(1, -1).astype(jnp.float32)
    return y.reshape(B, S, D).astype(x.dtype)


def init_params(key, dimension, hidden_width, dtype=jnp.float32):
    """Deterministic init matching nn.Linear shapes (weights stored transposed)."""
    k1, k2, k3, k4 = jax.random.split(key, 4)
    bound1 = 1.0 / jnp.sqrt(dimension)
    bound2 = 1.0 / jnp.sqrt(hidden_width)
    return {
        # PyTorch lin1.weight is [H, D]; stored transposed [D, H].
        "w1": jax.random.uniform(k1, (dimension, hidden_width), dtype,
                                 minval=-bound1, maxval=bound1),
        "b1": jax.random.uniform(k2, (1, hidden_width), dtype,
                                 minval=-bound1, maxval=bound1),
        # PyTorch lin2.weight is [D, H]; stored transposed [H, D].
        "w2": jax.random.uniform(k3, (hidden_width, dimension), dtype,
                                 minval=-bound2, maxval=bound2),
        "b2": jax.random.uniform(k4, (1, dimension), dtype,
                                 minval=-bound2, maxval=bound2),
    }


if __name__ == "__main__":
    key = jax.random.PRNGKey(0)
    k_params, k_x, k_params2, k_x2 = jax.random.split(key, 4)

    # Small shapes implied by the module.
    batch, seq, dim, hidden = 2, 8, 16, 32
    params = init_params(k_params, dim, hidden)
    x = jax.random.normal(k_x, (batch, seq, dim), dtype=jnp.float32)

    # Eval mode (dropout = identity) — exercises the resident-weights fast path.
    out = jax.block_until_ready(feed_forward(x, params, dropout_p=0.1, training=False))
    ref = _reference(x, params)
    assert out.shape == (batch, seq, dim)
    assert jnp.allclose(out, ref, atol=2e-2, rtol=2e-2), float(jnp.max(jnp.abs(out - ref)))

    # Streamed path (H-reduction grid with f32 VMEM accumulator), forced explicitly.
    dim2, hidden2 = 128, 256
    params2 = init_params(k_params2, dim2, hidden2)
    x2 = jax.random.normal(k_x2, (batch, seq, dim2), dtype=jnp.float32)
    out2 = jax.block_until_ready(
        feed_forward(x2, params2, training=False, weights_resident=False, th_target=128))
    ref2 = _reference(x2, params2)
    assert jnp.allclose(out2, ref2, atol=2e-2, rtol=2e-2), float(jnp.max(jnp.abs(out2 - ref2)))

    # Training mode (dropout active; statistics match torch, bits do not).
    out_tr = jax.block_until_ready(
        feed_forward(x, params, dropout_p=0.1, training=True, seed=42))
    assert out_tr.shape == (batch, seq, dim)
    assert bool(jnp.all(jnp.isfinite(out_tr)))
    assert not bool(jnp.allclose(out_tr, out, atol=1e-6))   # dropout actually changed something

    out_tr2 = jax.block_until_ready(
        feed_forward(x2, params2, dropout_p=0.1, training=True, seed=7,
                     weights_resident=False, th_target=128))
    assert bool(jnp.all(jnp.isfinite(out_tr2)))

    print("KERNEL_OK")
</pallas_src>

<mosaic_0001>
module attributes {stable_mosaic.version = 11 : i64} {
  func.func @_resident_eval_kernel(%arg0: i32, %arg1: memref<16x16xbf16, #tpu.memory_space<vmem>>, %arg2: memref<16x32xbf16, #tpu.memory_space<vmem>>, %arg3: memref<1x32xf32, #tpu.memory_space<vmem>>, %arg4: memref<32x16xbf16, #tpu.memory_space<vmem>>, %arg5: memref<1x16xf32, #tpu.memory_space<vmem>>, %arg6: memref<16x16xf32, #tpu.memory_space<vmem>>) attributes {dimension_semantics = [#tpu.dimension_semantics<parallel>], iteration_bounds = array<i64: 1>, scalar_prefetch = 0 : i64, scratch_operands = 0 : i64, tpu.core_type = #tpu.core_type<tc>, window_params = [{transform_indices = @transform_0, window_bounds = array<i64: 16, 16>}, {pipeline_mode = #tpu.pipeline_mode<synchronous>, transform_indices = @transform_1, window_bounds = array<i64: 16, 32>}, {pipeline_mode = #tpu.pipeline_mode<synchronous>, transform_indices = @transform_2, window_bounds = array<i64: 1, 32>}, {pipeline_mode = #tpu.pipeline_mode<synchronous>, transform_indices = @transform_3, window_bounds = array<i64: 32, 16>}, {pipeline_mode = #tpu.pipeline_mode<synchronous>, transform_indices = @transform_4, window_bounds = array<i64: 1, 16>}, {transform_indices = @transform_5, window_bounds = array<i64: 16, 16>}]} {
    %c0 = arith.constant 0 : index
    %c0_0 = arith.constant 0 : index
    %0 = vector.load %arg1[%c0, %c0_0] : memref<16x16xbf16, #tpu.memory_space<vmem>>, vector<16x16xbf16>
    %c0_1 = arith.constant 0 : index
    %c0_2 = arith.constant 0 : index
    %1 = vector.load %arg2[%c0_1, %c0_2] : memref<16x32xbf16, #tpu.memory_space<vmem>>, vector<16x32xbf16>
    %cst = arith.constant dense<0.000000e+00> : vector<16x32xf32>
    %2 = tpu.matmul %0, %1, %cst {dimension_numbers = #tpu.dot_dimension_numbers<[1], [0], [0], [1], [0, 0, 1, 1], [], []>} : vector<16x16xbf16>, vector<16x32xbf16>, vector<16x32xf32> -> vector<16x32xf32>
    %c0_3 = arith.constant 0 : index
    %c0_4 = arith.constant 0 : index
    %3 = vector.load %arg3[%c0_3, %c0_4] : memref<1x32xf32, #tpu.memory_space<vmem>>, vector<1x32xf32>
    %4 = vector.broadcast %3 : vector<1x32xf32> to vector<16x32xf32>
    %5 = arith.addf %2, %4 : vector<16x32xf32>
    %cst_5 = arith.constant 0.000000e+00 : f32
    %6 = vector.broadcast %cst_5 : f32 to vector<16x32xf32>
    %7 = arith.maximumf %5, %6 : vector<16x32xf32>
    %8 = arith.truncf %7 : vector<16x32xf32> to vector<16x32xbf16>
    %c0_6 = arith.constant 0 : index
    %c0_7 = arith.constant 0 : index
    %9 = vector.load %arg4[%c0_6, %c0_7] : memref<32x16xbf16, #tpu.memory_space<vmem>>, vector<32x16xbf16>
    %cst_8 = arith.constant dense<0.000000e+00> : vector<16x16xf32>
    %10 = tpu.matmul %8, %9, %cst_8 {dimension_numbers = #tpu.dot_dimension_numbers<[1], [0], [0], [1], [0, 0, 1, 1], [], []>} : vector<16x32xbf16>, vector<32x16xbf16>, vector<16x16xf32> -> vector<16x16xf32>
    %c0_9 = arith.constant 0 : index
    %c0_10 = arith.constant 0 : index
    %11 = vector.load %arg5[%c0_9, %c0_10] : memref<1x16xf32, #tpu.memory_space<vmem>>, vector<1x16xf32>
    %12 = vector.broadcast %11 : vector<1x16xf32> to vector<16x16xf32>
    %13 = arith.addf %10, %12 : vector<16x16xf32>
    %c0_11 = arith.constant 0 : index
    %c0_12 = arith.constant 0 : index
    %14 = vector.load %arg6[%c0_11, %c0_12] : memref<16x16xf32, #tpu.memory_space<vmem>>, vector<16x16xf32>
    tpu.vector_store %arg6[%c0_11, %c0_12], %13 {strides = array<i32>} : memref<16x16xf32, #tpu.memory_space<vmem>>, vector<16x16xf32>,
    return
  }
  func.func @transform_0(%arg0: i32) -> (i32, i32) {
    %c0_i32 = arith.constant 0 : i32
    %c0_i32_0 = arith.constant 0 : i32
    return %arg0, %c0_i32 : i32, i32
  }
  func.func @transform_1(%arg0: i32) -> (i32, i32) {
    %c0_i32 = arith.constant 0 : i32
    %c0_i32_0 = arith.constant 0 : i32
    %c0_i32_1 = arith.constant 0 : i32
    return %c0_i32, %c0_i32_0 : i32, i32
  }
  func.func @transform_2(%arg0: i32) -> (i32, i32) {
    %c0_i32 = arith.constant 0 : i32
    %c0_i32_0 = arith.constant 0 : i32
    %c0_i32_1 = arith.constant 0 : i32
    return %c0_i32, %c0_i32_0 : i32, i32
  }
  func.func @transform_3(%arg0: i32) -> (i32, i32) {
    %c0_i32 = arith.constant 0 : i32
    %c0_i32_0 = arith.constant 0 : i32
    %c0_i32_1 = arith.constant 0 : i32
    return %c0_i32, %c0_i32_0 : i32, i32
  }
  func.func @transform_4(%arg0: i32) -> (i32, i32) {
    %c0_i32 = arith.constant 0 : i32
    %c0_i32_0 = arith.constant 0 : i32
    %c0_i32_1 = arith.constant 0 : i32
    return %c0_i32, %c0_i32_0 : i32, i32
  }
  func.func @transform_5(%arg0: i32) -> (i32, i32) {
    %c0_i32 = arith.constant 0 : i32
    %c0_i32_0 = arith.constant 0 : i32
    return %arg0, %c0_i32 : i32, i32
  }
}

</mosaic_0001>

<bundles_post_ra>
// kernel: tpu_custom_call.1
= control target key start
LH: loop header
LB: loop body
LE: loop exit
PB: predicated region body
PF: predicated region fallthrough
CT: control target
= control target key end

     0   :  { %10 = vsyncpa [#allocation3], 0  ;;  %s561_s0 = inlined_call_operand.hbm [shape: bf16[16,16], index: 0, kind: input, shape index: {}]   ;;  %s562_s1 = inlined_call_operand.hbm [shape: bf16[16,32], index: 1, kind: input, shape index: {}]   ;;  %s563_s2 = inlined_call_operand.hbm [shape: f32[1,32], index: 2, kind: input, shape index: {}]   ;;  %s564_s3 = inlined_call_operand.hbm [shape: bf16[32,16], index: 3, kind: input, shape index: {}]   ;;  %s565_s4 = inlined_call_operand.hbm [shape: f32[1,16], index: 4, kind: input, shape index: {}]   ;;  %s566_s5 = inlined_call_operand.hbm [shape: f32[16,16], index: 5, kind: output, shape index: {}]  }
   0x1   :  { %11 = vsyncpa [#allocation6], 0 }
   0x2   :  { %12 = vsyncpa [#allocation9], 0 }
   0x3   :  { %13 = vsyncpa [#allocation4], 0  ;;  %s428_s18 = smov [#allocation5]   ;;  %s429_s20 = smov [#allocation8]  }
   0x4   :  { %s31_s19 = sshll.u32 %s428_s18, 4  ;;  %s53_s21 = sshll.u32 %s429_s20, 4  ;;  %s32_s19 = int_to_ptr.vmem [resolvable:$true] %s31_s19  ;;  %s470_s21 = int_to_ptr.vmem [resolvable:$true] %s53_s21 }
   0x5   :  { %s288_s24 = scalar_lea.hbm %s562_s1, 128 }
   0x6   :  { %p289_p0 = scmp.ne.s32.totalorder %s562_s1, %s288_s24  ;;  %p292_p1 = scmp.lt.u32.totalorder %s288_s24, %s562_s1 }
   0x8   :  { %p294_p2 = pnand %p292_p1, %p289_p0 }
   0xa   :  { %297 = shalt.err (!%p294_p2)
}
   0xb   :  { %s298_s29 = scalar_lea.vmem %s32_s19, 128  ;;  %p303_p4 = scmp.lt.s32.totalorder %s32_s19, %s32_s19 }
   0xc   :  { %p299_p3 = scmp.ne.s32.totalorder %s32_s19, %s298_s29  ;;  %p304_p5 = scmp.lt.s32.totalorder %s298_s29, %s298_s29 }
   0xe   :  { %p305_p6 = por %p304_p5, %p303_p4 }
  0x10   :  { %p306_p7 = pnand %p305_p6, %p299_p3 }
  0x12   :  { %309 = shalt.err (!%p306_p7)
}
  0x13   :  { %s430_s30 = smov 64   ;;  %s431_s6 = smov 4  }
  0x14   :  { %37 = dma.hbm_to_vmem [thread:$0]  %s562_s1, 128, %s32_s19, [#allocation6], %s430_s30, %s430_s30, %s431_s6  }
  0x15   :  { %s310_s11 = scalar_lea.hbm %s564_s3, 256 }
  0x16   :  { %p311_p8 = scmp.ne.s32.totalorder %s564_s3, %s310_s11  ;;  %p314_p9 = scmp.lt.u32.totalorder %s310_s11, %s564_s3 }
  0x18   :  { %p316_p10 = pnand %p314_p9, %p311_p8 }
  0x1a   :  { %319 = shalt.err (!%p316_p10)
}
  0x1b   :  { %s320_s16 = scalar_lea.vmem %s470_s21, 256  ;;  %p325_p12 = scmp.lt.s32.totalorder %s470_s21, %s470_s21 }
  0x1c   :  { %p321_p11 = scmp.ne.s32.totalorder %s470_s21, %s320_s16  ;;  %p326_p13 = scmp.lt.s32.totalorder %s320_s16, %s320_s16 }
  0x1e   :  { %p327_p0 = por %p326_p13, %p325_p12 }
  0x20   :  { %p328_p1 = pnand %p327_p0, %p321_p11 }
  0x22   :  { %331 = shalt.err (!%p328_p1)
}
  0x23   :  { %59 = dma.hbm_to_vmem [thread:$0]  %s564_s3, 256, %s470_s21, [#allocation9], %s430_s30, %s430_s30, %s431_s6  }
  0x24   :  { %s432_s18 = smov [#allocation2]   ;;  %s433_s20 = smov [#allocation7]  }
  0x25   :  { %s19_s19 = sshll.u32 %s432_s18, 4  ;;  %s44_s22 = sshll.u32 %s433_s20, 4  ;;  %s20_s19 = int_to_ptr.vmem [resolvable:$true] %s19_s19  ;;  %s45_s22 = int_to_ptr.vmem [resolvable:$true] %s44_s22 }
  0x26   :  { %s332_s25 = scalar_lea.hbm %s561_s0, 128 }
  0x27   :  { %p333_p2 = scmp.ne.s32.totalorder %s561_s0, %s332_s25  ;;  %p336_p3 = scmp.lt.u32.totalorder %s332_s25, %s561_s0 }
  0x29   :  { %p338_p4 = pnand %p336_p3, %p333_p2 }
  0x2b   :  { %341 = shalt.err (!%p338_p4)
}
  0x2c   :  { %s342_s3 = scalar_lea.vmem %s20_s19, 128  ;;  %p347_p6 = scmp.lt.s32.totalorder %s20_s19, %s20_s19 }
  0x2d   :  { %p343_p5 = scmp.ne.s32.totalorder %s20_s19, %s342_s3  ;;  %p348_p7 = scmp.lt.s32.totalorder %s342_s3, %s342_s3 }
  0x2f   :  { %p349_p8 = por %p348_p7, %p347_p6 }
  0x31   :  { %p350_p9 = pnand %p349_p8, %p343_p5 }
  0x33   :  { %353 = shalt.err (!%p350_p9)
}
  0x34   :  { %25 = dma.hbm_to_vmem [thread:$0]  %s561_s0, 128, %s20_s19, [#allocation3], %s430_s30, %s430_s30, %s431_s6  }
  0x35   :  { %s354_s10 = scalar_lea.hbm %s563_s2, 16 }
  0x36   :  { %p355_p10 = scmp.ne.s32.totalorder %s563_s2, %s354_s10  ;;  %p358_p11 = scmp.lt.u32.totalorder %s354_s10, %s563_s2 }
  0x38   :  { %p360_p12 = pnand %p358_p11, %p355_p10 }
  0x3a   :  { %363 = shalt.err (!%p360_p12)
}
  0x3b   :  { %s364_s15 = scalar_lea.vmem %s45_s22, 16  ;;  %s368_s16 = scalar_lea.vmem %s45_s22, 32 }
  0x3c   :  { %p365_p13 = scmp.ne.s32.totalorder %s45_s22, %s364_s15  ;;  %p369_p0 = scmp.lt.s32.totalorder %s45_s22, %s45_s22 }
  0x3d   :  { %p370_p1 = scmp.lt.s32.totalorder %s368_s16, %s364_s15 }
  0x3f   :  { %p371_p2 = por %p370_p1, %p369_p0 }
  0x41   :  { %p372_p3 = pnand %p371_p2, %p365_p13 }
  0x43   :  { %375 = shalt.err (!%p372_p3)
}
  0x44   :  { %47 = dma.hbm_to_vmem [thread:$0]  %s563_s2, 16, %s45_s22, [#allocation6]  }
  0x45   :  { %s434_s6 = smov [#allocation10]   ;;  %s376_s19 = scalar_lea.hbm %s565_s4, 16 }
  0x46   :  { %s66_s1 = sshll.u32 %s434_s6, 4  ;;  %p377_p4 = scmp.ne.s32.totalorder %s565_s4, %s376_s19  ;;  %s67_s1 = int_to_ptr.vmem [resolvable:$true] %s66_s1 }
  0x47   :  { %p380_p5 = scmp.lt.u32.totalorder %s376_s19, %s565_s4 }
  0x49   :  { %p382_p6 = pnand %p380_p5, %p377_p4 }
  0x4b   :  { %385 = shalt.err (!%p382_p6)
}
  0x4c   :  { %s386_s26 = scalar_lea.vmem %s67_s1, 16  ;;  %s390_s2 = scalar_lea.vmem %s67_s1, 32 }
  0x4d   :  { %p387_p7 = scmp.ne.s32.totalorder %s67_s1, %s386_s26  ;;  %p391_p8 = scmp.lt.s32.totalorder %s67_s1, %s67_s1 }
  0x4e   :  { %p392_p9 = scmp.lt.s32.totalorder %s390_s2, %s386_s26 }
  0x50   :  { %p393_p10 = por %p392_p9, %p391_p8 }
  0x52   :  { %p394_p11 = pnand %p393_p10, %p387_p7 }
  0x54   :  { %397 = shalt.err (!%p394_p11)
}
  0x55   :  { %69 = dma.hbm_to_vmem [thread:$0]  %s565_s4, 16, %s67_s1, [#allocation9]  }
  0x56   :  { %420 = dma.done.wait [#allocation3], 128  }
  0x57   :  { %421 = vsyncadd [#allocation3], 4294967168 }
  0x58   :  { %422 = dma.done.wait [#allocation6], 144  }
  0x59   :  { %423 = vsyncadd [#allocation6], 4294967152 }
  0x5a   :  { %424 = dma.done.wait [#allocation9], 272  }
  0x5b   :  { %425 = vsyncadd [#allocation9], 4294967024  ;;  %v435_v0 = vmov 0.0   ;;  %vm436_vm0 = vmmov 0   ;;  %v284_v1 = vld [vmem:[#allocation5] sm:$0xff]   ;;  %v285_v2 = vld [vmem:[#allocation2] sm:$0xff]  }
  0x5c   :  { %258 = vmatprep.subr.bf16.mxu0 %v435_v0  ;;  %260 = vmatprep.mubr.msk.bf16.mxu0 %vm436_vm0, %v435_v0  ;;  %vm108_vm1 = vcmask 130048   ;;  %v286_v3 = vld [vmem:[#allocation8] sm:$0xff]   ;;  %v287_v4 = vld [vmem:[#allocation8 + $0x8] sm:$0xff]   ;;  %v245_v5 = vld [vmem:[#allocation7] ss:$0 sm:$0xff]  ;;  %vm179_vm2 = vcmask 261120  }
  0x5d   :  { %264 = vmatprep.subr.bf16.mxu1 %v435_v0  ;;  %268 = vmatprep.mubr.msk.bf16.mxu1 %vm436_vm0, %v435_v0  ;;  %v249_v15 = vld [vmem:[#allocation10] ss:$0 sm:$0xff]  ;;  %s437_s4 = smov [#allocation11]  }
  0x5e   :  { %259 = vmatpush3.bf16.msra.mxu0 %v284_v1  ;;  %265 = vmatpush3.bf16.msra.mxu1 %v286_v3  ;;  %s231_s28 = sshll.u32 %s437_s4, 4  ;;  %s232_s28 = int_to_ptr.vmem [resolvable:$true] %s231_s28 }
  0x5f   :  { %266 = vmatprep.subr.bf16.mxu1 %v435_v0  ;;  %s398_s29 = scalar_lea.vmem %s232_s28, 256  ;;  %p403_p13 = scmp.lt.s32.totalorder %s232_s28, %s232_s28 }
  0x60   :  { %p399_p12 = scmp.ne.s32.totalorder %s232_s28, %s398_s29  ;;  %p404_p0 = scmp.lt.s32.totalorder %s398_s29, %s398_s29 }
  0x61   :  { %261 = vmatmul.mubr.msk.bf16.vlgmr.msra.gmra.mrb[0].mxu0 %vm108_vm1, %v285_v2 }
  0x62   :  { %267 = vmatpush3.bf16.msra.mxu1 %v287_v4  ;;  %p405_p1 = por %p404_p0, %p403_p13 }
  0x64   :  { %p406_p2 = pnand %p405_p1, %p399_p12 }
 0x134   :  { %v146_v6 = vpop.f32.mrb[0].mxu0 }
 0x135   :  { %v147_v7 = vadd.f32 %v245_v5, %v146_v6  ;;  %v262_v8 = vpop.f32.mrb[1].mxu0 }
 0x136   :  { %v149_v9 = vpop.f32.mrb[2].mxu0 }
 0x137   :  { %v150_v10 = vadd.f32 %v245_v5, %v149_v9  ;;  %v263_v11 = vpop.f32.mrb[3].mxu0  ;;  %v153_v12 = vmax.f32 %v147_v7, 0.0 }
 0x139   :  { %v154_v13 = vmax.f32 %v150_v10, 0.0 }
 0x13b   :  { %v155_v14 = vpack.c.bf16 %v154_v13, %v153_v12 }
 0x13d   :  { %269 = vmatmul.mubr.msk.bf16.vlgmr.msra.gmra.mrb[0].mxu1 %vm179_vm2, %v155_v14 }
 0x210   :  { %v217_v16 = vpop.f32.mrb[0].mxu1 }
 0x211   :  { %v218_v17 = vadd.f32 %v249_v15, %v217_v16  ;;  %v270_v18 = vpop.f32.mrb[1].mxu1 }
 0x212   :  { %v220_v19 = vpop.f32.mrb[2].mxu1 }
 0x213   :  { %224 = vst.msk [vmem:[#allocation11] sm:$0xff] %vm108_vm1, %v218_v17  ;;  %v221_v20 = vadd.f32 %v249_v15, %v220_v19  ;;  %v271_v21 = vpop.f32.mrb[3].mxu1 }
 0x215   :  { %225 = vst.msk [vmem:[#allocation11 + $0x8] sm:$0xff] %vm108_vm1, %v221_v20 }
 0x216   :  { %409 = shalt.err (!%p406_p2)
}
 0x217   :  { %s410_s7 = scalar_lea.hbm %s566_s5, 256 }
 0x218   :  { %p411_p3 = scmp.ne.s32.totalorder %s566_s5, %s410_s7  ;;  %p414_p4 = scmp.lt.u32.totalorder %s410_s7, %s566_s5 }
 0x21a   :  { %p416_p5 = pnand %p414_p4, %p411_p3 }
 0x21c   :  { %419 = shalt.err (!%p416_p5)
}
 0x21d   :  { %s438_s12 = smov 128   ;;  %s439_s13 = smov 8  }
 0x21e   :  { %237 = dma.vmem_to_hbm [thread:$0]  %s232_s28, 256, %s566_s5, [#allocation4], %s438_s12, %s438_s12, %s439_s13  }
 0x21f   :  { %426 = dma.done.wait [#allocation4], 256  }
 0x220   :  { %427 = vsyncadd [#allocation4], 4294967040 }
 0x221   :  { %241 = vsyncpa [#allocation3], 1 }
 0x222   :  { %242 = vsyncpa [#allocation6], 1 }
 0x223   :  { %243 = vsyncpa [#allocation9], 1 }
 0x224   :  { %244 = vsyncpa [#allocation4], 1 }

</bundles_post_ra>
